<compile_context>
chip_gen: v7x
topology: tpu7x:2x2x1
jax: 0.10.0
libtpu: 0.0.40
codegen_flags: <defaults>
</compile_context>

<pallas_src>
import functools
import math

import numpy as np

import jax
import jax.numpy as jnp
from jax import lax
from jax.experimental import pallas as pl
from jax.experimental.pallas import tpu as pltpu


def _fused_sem_graph_conv_kernel(
    feat_ref,     # (B*N, Fin)
    fm_ref,       # (B*N, Fmut)
    wdiff_ref,    # (Fin, Fout)   == W0 - W1
    w1_ref,       # (Fin, Fout)
    aw_ref,       # (Fmut, P)
    bias_ref,     # (1, Fout)
    seln_ref,     # (N*P, N)  0/1: row k selects joint n = k % N
    selp_ref,     # (N*P, P)  0/1: row k selects pose  p = k // N
    colj_ref,     # (N*P, N)  0/1: entry k lands in logits column j(k)
    rowi_ref,     # (N, N*P)  0/1: entry k lands in logits row    i(k)
    negoff_ref,   # (N, N)    0 on mutual edges, -9e15 elsewhere
    o_ref,        # (B*N, Fout)
    *, batch, n_joints,
):
    n = n_joints

    # ---- dense matmuls with batch folded into the M (row) dimension ----------
    hd = jnp.dot(feat_ref[...], wdiff_ref[...],
                 preferred_element_type=jnp.float32)               # (B*N, Fout) == h0 - h1
    h1 = jnp.dot(feat_ref[...], w1_ref[...],
                 preferred_element_type=jnp.float32)               # (B*N, Fout)
    e = jnp.dot(fm_ref[...], aw_ref[...],
                preferred_element_type=jnp.float32)                # (B*N, P)

    sel_n = seln_ref[...]
    sel_p = selp_ref[...]
    colj = colj_ref[...]
    rowi = rowi_ref[...]
    negoff = negoff_ref[...]
    bias = bias_ref[...]

    # Identity mask for diag(s) extraction — built once, reused for every batch.
    rr = lax.broadcasted_iota(jnp.int32, (n, n), 0)
    cc = lax.broadcasted_iota(jnp.int32, (n, n), 1)
    eye = (rr == cc).astype(jnp.float32)

    # ---- per-batch mutual attention (tiny static unroll over the batch) ------
    for b in range(batch):
        r0 = b * n
        e_b = e[r0:r0 + n, :]                                       # (N, P)

        # e.permute(0,2,1).reshape + boolean-mask scatter + permute(0,2,1),
        # expressed with constant 0/1 matmuls:
        #   u[k]         = e_b[k % N, k // N]        (PyTorch flatten order)
        #   logits[i, j] = u[k(i,j)] on mutual edges, -9e15 elsewhere.
        t = jnp.dot(sel_n, e_b, preferred_element_type=jnp.float32)      # (N*P, P)
        u = jnp.sum(t * sel_p, axis=-1, keepdims=True)                   # (N*P, 1)
        logits = jnp.dot(rowi, u * colj,
                         preferred_element_type=jnp.float32) + negoff    # (N, N)

        # Row softmax (== F.softmax(adj_mutual, dim=2)).
        mx = jnp.max(logits, axis=-1, keepdims=True)
        pz = jnp.exp(logits - mx)
        s = pz / jnp.sum(pz, axis=-1, keepdims=True)                     # (N, N)

        d = jnp.sum(s * eye, axis=-1, keepdims=True)                     # diag(s), (N, 1)

        # (s*I)@h0 + (s*(1-I))@h1  ==  diag(s)*(h0-h1) + s@h1
        out_b = d * hd[r0:r0 + n, :] + jnp.dot(
            s, h1[r0:r0 + n, :], preferred_element_type=jnp.float32)
        o_ref[pl.ds(r0, n), :] = out_b + bias


def _full_spec(shape):
    return pl.BlockSpec(shape, lambda *_: (0,) * len(shape))


def multi_sem_graph_conv(feat, feat_mutual, W, adj_mutual_W, bias, adj_mutual):
    B, N, Fin = feat.shape
    Fout = W.shape[-1]
    Fmut = feat_mutual.shape[-1]
    P = adj_mutual_W.shape[-1]            # pose_num

    # ---- compile-time constants derived from the static mutual adjacency -----
    mask = np.asarray(adj_mutual) > 0     # valid(i, j) of the *final* (transposed) logits
    m_mutual = mask.T
    rows_k, cols_k = np.nonzero(m_mutual)  # row-major == PyTorch boolean-mask scatter order
    K = int(rows_k.shape[0])
    if K != N * P:
        raise ValueError("adj_mutual nonzero count must equal pose_num * N "
                         "(required by the PyTorch boolean-mask assignment)")

    k = np.arange(K)
    sel_n = (k[:, None] % N == np.arange(N)[None, :]).astype(np.float32)    # (K, N)
    sel_p = (k[:, None] // N == np.arange(P)[None, :]).astype(np.float32)   # (K, P)
    colj = (rows_k[:, None] == np.arange(N)[None, :]).astype(np.float32)    # (K, N)
    rowi = (np.arange(N)[:, None] == cols_k[None, :]).astype(np.float32)    # (N, K)
    negoff = np.where(mask, 0.0, -9.0e15).astype(np.float32)                # (N, N)

    # ---- fold batch into the matmul M dimension; precombine weights ----------
    feat2d = feat.reshape(B * N, Fin)
    fm2d = feat_mutual.reshape(B * N, Fmut)
    w_diff = (W[0] - W[1]).astype(jnp.float32)
    w1 = W[1].astype(jnp.float32)
    bias2d = bias.reshape(1, Fout).astype(jnp.float32)

    kernel = functools.partial(_fused_sem_graph_conv_kernel, batch=B, n_joints=N)

    out2d = pl.pallas_call(
        kernel,
        out_shape=jax.ShapeDtypeStruct((B * N, Fout), jnp.float32),
        grid=(1,),
        in_specs=[
            _full_spec((B * N, Fin)),
            _full_spec((B * N, Fmut)),
            _full_spec((Fin, Fout)),
            _full_spec((Fin, Fout)),
            _full_spec((Fmut, P)),
            _full_spec((1, Fout)),
            _full_spec((K, N)),
            _full_spec((K, P)),
            _full_spec((K, N)),
            _full_spec((N, K)),
            _full_spec((N, N)),
        ],
        out_specs=_full_spec((B * N, Fout)),
        compiler_params=pltpu.CompilerParams(dimension_semantics=("arbitrary",)),
    )(feat2d, fm2d, w_diff, w1, adj_mutual_W.astype(jnp.float32), bias2d,
      jnp.asarray(sel_n), jnp.asarray(sel_p), jnp.asarray(colj),
      jnp.asarray(rowi), jnp.asarray(negoff))

    return out2d.reshape(B, N, Fout)


def reference(feat, feat_mutual, W, adj_mutual_W, bias, adj_mutual):
    """Pure-JAX replica of the PyTorch forward for verification."""
    B, N, _ = feat.shape
    with jax.default_matmul_precision("float32"):
        h0 = feat @ W[0]
        h1 = feat @ W[1]
        e = feat_mutual @ adj_mutual_W
        e = jnp.transpose(e, (0, 2, 1)).reshape(B, -1)
        mask = np.asarray(adj_mutual > 0).T
        rows, cols = np.nonzero(mask)
        adj = jnp.full((B, N, N), -9.0e15, dtype=jnp.float32)
        adj = adj.at[:, rows, cols].set(e)
        adj = jnp.transpose(adj, (0, 2, 1))
        adj = jax.nn.softmax(adj, axis=2)
        M = jnp.eye(N, dtype=jnp.float32)
        out = (adj * M) @ h0 + (adj * (1.0 - M)) @ h1
        return out + bias.reshape(1, 1, -1)


if __name__ == "__main__":
    # Small, self-consistent shapes.
    B = 2
    person_num = 2
    pose_num = 8
    N = person_num * pose_num          # 16 joints total
    Fin = 4
    Fout = 32
    Fmut = pose_num * 2 * 2            # 32, per the module's docstring

    key = jax.random.PRNGKey(0)
    k_feat, k_fm, k_w, k_aw, k_b = jax.random.split(key, 5)

    feat = jax.random.normal(k_feat, (B, N, Fin), dtype=jnp.float32)
    feat_mutual = jax.random.normal(k_fm, (B, N, Fmut), dtype=jnp.float32)

    # Deterministic synthetic parameter init (xavier-uniform-like, gain=1.414).
    gain = 1.414
    bw = gain * math.sqrt(6.0 / (Fin + Fout))
    W = jax.random.uniform(k_w, (2, Fin, Fout), jnp.float32, -bw, bw)
    ba = gain * math.sqrt(6.0 / (Fmut + pose_num))
    adj_mutual_W = jax.random.uniform(k_aw, (Fmut, pose_num), jnp.float32, -ba, ba)
    stdv = 1.0 / math.sqrt(Fout)
    bias = jax.random.uniform(k_b, (Fout,), jnp.float32, -stdv, stdv)

    # Mutual adjacency: joints of different people are connected (>0), so the
    # number of nonzeros = pose_num * N, matching the scatter size of e.
    person_id = np.repeat(np.arange(person_num), pose_num)
    adj_mutual = (person_id[:, None] != person_id[None, :]).astype(np.float32)

    out = multi_sem_graph_conv(feat, feat_mutual, W, adj_mutual_W, bias, adj_mutual)
    out = jax.block_until_ready(out)

    ref = reference(feat, feat_mutual, W, adj_mutual_W, bias, adj_mutual)
    assert out.shape == (B, N, Fout)
    np.testing.assert_allclose(np.asarray(out), np.asarray(ref), rtol=1e-3, atol=1e-3)
    print("KERNEL_OK")
</pallas_src>

<mosaic_0001>
module attributes {stable_mosaic.version = 11 : i64} {
  func.func @_fused_sem_graph_conv_kernel(%arg0: i32, %arg1: memref<32x4xf32, #tpu.memory_space<vmem>>, %arg2: memref<32x32xf32, #tpu.memory_space<vmem>>, %arg3: memref<4x32xf32, #tpu.memory_space<vmem>>, %arg4: memref<4x32xf32, #tpu.memory_space<vmem>>, %arg5: memref<32x8xf32, #tpu.memory_space<vmem>>, %arg6: memref<1x32xf32, #tpu.memory_space<vmem>>, %arg7: memref<128x16xf32, #tpu.memory_space<vmem>>, %arg8: memref<128x8xf32, #tpu.memory_space<vmem>>, %arg9: memref<128x16xf32, #tpu.memory_space<vmem>>, %arg10: memref<16x128xf32, #tpu.memory_space<vmem>>, %arg11: memref<16x16xf32, #tpu.memory_space<vmem>>, %arg12: memref<32x32xf32, #tpu.memory_space<vmem>>) attributes {dimension_semantics = [#tpu.dimension_semantics<arbitrary>], iteration_bounds = array<i64: 1>, scalar_prefetch = 0 : i64, scratch_operands = 0 : i64, tpu.core_type = #tpu.core_type<tc>, window_params = [{pipeline_mode = #tpu.pipeline_mode<synchronous>, transform_indices = @transform_0, window_bounds = array<i64: 32, 4>}, {pipeline_mode = #tpu.pipeline_mode<synchronous>, transform_indices = @transform_1, window_bounds = array<i64: 32, 32>}, {pipeline_mode = #tpu.pipeline_mode<synchronous>, transform_indices = @transform_2, window_bounds = array<i64: 4, 32>}, {pipeline_mode = #tpu.pipeline_mode<synchronous>, transform_indices = @transform_3, window_bounds = array<i64: 4, 32>}, {pipeline_mode = #tpu.pipeline_mode<synchronous>, transform_indices = @transform_4, window_bounds = array<i64: 32, 8>}, {pipeline_mode = #tpu.pipeline_mode<synchronous>, transform_indices = @transform_5, window_bounds = array<i64: 1, 32>}, {pipeline_mode = #tpu.pipeline_mode<synchronous>, transform_indices = @transform_6, window_bounds = array<i64: 128, 16>}, {pipeline_mode = #tpu.pipeline_mode<synchronous>, transform_indices = @transform_7, window_bounds = array<i64: 128, 8>}, {pipeline_mode = #tpu.pipeline_mode<synchronous>, transform_indices = @transform_8, window_bounds = array<i64: 128, 16>}, {pipeline_mode = #tpu.pipeline_mode<synchronous>, transform_indices = @transform_9, window_bounds = array<i64: 16, 128>}, {pipeline_mode = #tpu.pipeline_mode<synchronous>, transform_indices = @transform_10, window_bounds = array<i64: 16, 16>}, {pipeline_mode = #tpu.pipeline_mode<synchronous>, transform_indices = @transform_11, window_bounds = array<i64: 32, 32>}]} {
    %c0 = arith.constant 0 : index
    %c0_0 = arith.constant 0 : index
    %0 = vector.load %arg1[%c0, %c0_0] : memref<32x4xf32, #tpu.memory_space<vmem>>, vector<32x4xf32>
    %c0_1 = arith.constant 0 : index
    %c0_2 = arith.constant 0 : index
    %1 = vector.load %arg3[%c0_1, %c0_2] : memref<4x32xf32, #tpu.memory_space<vmem>>, vector<4x32xf32>
    %cst = arith.constant dense<0.000000e+00> : vector<32x32xf32>
    %2 = tpu.matmul %0, %1, %cst {dimension_numbers = #tpu.dot_dimension_numbers<[1], [0], [0], [1], [0, 0, 1, 1], [], []>} : vector<32x4xf32>, vector<4x32xf32>, vector<32x32xf32> -> vector<32x32xf32>
    %c0_3 = arith.constant 0 : index
    %c0_4 = arith.constant 0 : index
    %3 = vector.load %arg1[%c0_3, %c0_4] : memref<32x4xf32, #tpu.memory_space<vmem>>, vector<32x4xf32>
    %c0_5 = arith.constant 0 : index
    %c0_6 = arith.constant 0 : index
    %4 = vector.load %arg4[%c0_5, %c0_6] : memref<4x32xf32, #tpu.memory_space<vmem>>, vector<4x32xf32>
    %cst_7 = arith.constant dense<0.000000e+00> : vector<32x32xf32>
    %5 = tpu.matmul %3, %4, %cst_7 {dimension_numbers = #tpu.dot_dimension_numbers<[1], [0], [0], [1], [0, 0, 1, 1], [], []>} : vector<32x4xf32>, vector<4x32xf32>, vector<32x32xf32> -> vector<32x32xf32>
    %c0_8 = arith.constant 0 : index
    %c0_9 = arith.constant 0 : index
    %6 = vector.load %arg2[%c0_8, %c0_9] : memref<32x32xf32, #tpu.memory_space<vmem>>, vector<32x32xf32>
    %c0_10 = arith.constant 0 : index
    %c0_11 = arith.constant 0 : index
    %7 = vector.load %arg5[%c0_10, %c0_11] : memref<32x8xf32, #tpu.memory_space<vmem>>, vector<32x8xf32>
    %cst_12 = arith.constant dense<0.000000e+00> : vector<32x8xf32>
    %8 = tpu.matmul %6, %7, %cst_12 {dimension_numbers = #tpu.dot_dimension_numbers<[1], [0], [0], [1], [0, 0, 1, 1], [], []>} : vector<32x32xf32>, vector<32x8xf32>, vector<32x8xf32> -> vector<32x8xf32>
    %c0_13 = arith.constant 0 : index
    %c0_14 = arith.constant 0 : index
    %9 = vector.load %arg7[%c0_13, %c0_14] : memref<128x16xf32, #tpu.memory_space<vmem>>, vector<128x16xf32>
    %c0_15 = arith.constant 0 : index
    %c0_16 = arith.constant 0 : index
    %10 = vector.load %arg8[%c0_15, %c0_16] : memref<128x8xf32, #tpu.memory_space<vmem>>, vector<128x8xf32>
    %c0_17 = arith.constant 0 : index
    %c0_18 = arith.constant 0 : index
    %11 = vector.load %arg9[%c0_17, %c0_18] : memref<128x16xf32, #tpu.memory_space<vmem>>, vector<128x16xf32>
    %c0_19 = arith.constant 0 : index
    %c0_20 = arith.constant 0 : index
    %12 = vector.load %arg10[%c0_19, %c0_20] : memref<16x128xf32, #tpu.memory_space<vmem>>, vector<16x128xf32>
    %c0_21 = arith.constant 0 : index
    %c0_22 = arith.constant 0 : index
    %13 = vector.load %arg11[%c0_21, %c0_22] : memref<16x16xf32, #tpu.memory_space<vmem>>, vector<16x16xf32>
    %c0_23 = arith.constant 0 : index
    %c0_24 = arith.constant 0 : index
    %14 = vector.load %arg6[%c0_23, %c0_24] : memref<1x32xf32, #tpu.memory_space<vmem>>, vector<1x32xf32>
    %15 = tpu.iota {dimensions = array<i32: 0>} : vector<16x16xi32>
    %16 = tpu.iota {dimensions = array<i32: 1>} : vector<16x16xi32>
    %17 = arith.cmpi eq, %15, %16 : vector<16x16xi32>
    %18 = arith.extui %17 : vector<16x16xi1> to vector<16x16xi32>
    %19 = arith.sitofp %18 : vector<16x16xi32> to vector<16x16xf32>
    %20 = vector.extract_strided_slice %8 {offsets = [0, 0], sizes = [16, 8], strides = [1, 1]} : vector<32x8xf32> to vector<16x8xf32>
    %cst_25 = arith.constant dense<0.000000e+00> : vector<128x8xf32>
    %21 = tpu.matmul %9, %20, %cst_25 {dimension_numbers = #tpu.dot_dimension_numbers<[1], [0], [0], [1], [0, 0, 1, 1], [], []>} : vector<128x16xf32>, vector<16x8xf32>, vector<128x8xf32> -> vector<128x8xf32>
    %22 = arith.mulf %21, %10 : vector<128x8xf32>
    %cst_26 = arith.constant dense<0.000000e+00> : vector<128xf32>
    %23 = vector.multi_reduction <add>, %22, %cst_26 [1] : vector<128x8xf32> to vector<128xf32>
    %24 = vector.shape_cast %23 : vector<128xf32> to vector<128x1xf32>
    %25 = vector.broadcast %24 : vector<128x1xf32> to vector<128x16xf32>
    %26 = arith.mulf %25, %11 : vector<128x16xf32>
    %cst_27 = arith.constant dense<0.000000e+00> : vector<16x16xf32>
    %27 = tpu.matmul %12, %26, %cst_27 {dimension_numbers = #tpu.dot_dimension_numbers<[1], [0], [0], [1], [0, 0, 1, 1], [], []>} : vector<16x128xf32>, vector<128x16xf32>, vector<16x16xf32> -> vector<16x16xf32>
    %28 = arith.addf %27, %13 : vector<16x16xf32>
    %cst_28 = arith.constant dense<0xFF800000> : vector<16xf32>
    %29 = vector.multi_reduction <maximumf>, %28, %cst_28 [1] : vector<16x16xf32> to vector<16xf32>
    %30 = vector.shape_cast %29 : vector<16xf32> to vector<16x1xf32>
    %31 = vector.broadcast %30 : vector<16x1xf32> to vector<16x16xf32>
    %32 = arith.subf %28, %31 : vector<16x16xf32>
    %33 = math.exp %32 : vector<16x16xf32>
    %cst_29 = arith.constant dense<0.000000e+00> : vector<16xf32>
    %34 = vector.multi_reduction <add>, %33, %cst_29 [1] : vector<16x16xf32> to vector<16xf32>
    %35 = vector.shape_cast %34 : vector<16xf32> to vector<16x1xf32>
    %36 = vector.broadcast %35 : vector<16x1xf32> to vector<16x16xf32>
    %37 = arith.divf %33, %36 : vector<16x16xf32>
    %38 = arith.mulf %37, %19 : vector<16x16xf32>
    %cst_30 = arith.constant dense<0.000000e+00> : vector<16xf32>
    %39 = vector.multi_reduction <add>, %38, %cst_30 [1] : vector<16x16xf32> to vector<16xf32>
    %40 = vector.shape_cast %39 : vector<16xf32> to vector<16x1xf32>
    %41 = vector.extract_strided_slice %2 {offsets = [0, 0], sizes = [16, 32], strides = [1, 1]} : vector<32x32xf32> to vector<16x32xf32>
    %42 = vector.broadcast %40 : vector<16x1xf32> to vector<16x32xf32>
    %43 = arith.mulf %42, %41 : vector<16x32xf32>
    %44 = vector.extract_strided_slice %5 {offsets = [0, 0], sizes = [16, 32], strides = [1, 1]} : vector<32x32xf32> to vector<16x32xf32>
    %cst_31 = arith.constant dense<0.000000e+00> : vector<16x32xf32>
    %45 = tpu.matmul %37, %44, %cst_31 {dimension_numbers = #tpu.dot_dimension_numbers<[1], [0], [0], [1], [0, 0, 1, 1], [], []>} : vector<16x16xf32>, vector<16x32xf32>, vector<16x32xf32> -> vector<16x32xf32>
    %46 = arith.addf %43, %45 : vector<16x32xf32>
    %47 = vector.broadcast %14 : vector<1x32xf32> to vector<16x32xf32>
    %48 = arith.addf %46, %47 : vector<16x32xf32>
    %c0_32 = arith.constant 0 : index
    %c0_33 = arith.constant 0 : index
    %49 = vector.load %arg12[%c0_32, %c0_33] : memref<32x32xf32, #tpu.memory_space<vmem>>, vector<16x32xf32>
    tpu.vector_store %arg12[%c0_32, %c0_33], %48 {strides = array<i32>} : memref<32x32xf32, #tpu.memory_space<vmem>>, vector<16x32xf32>,
    %50 = vector.extract_strided_slice %8 {offsets = [16, 0], sizes = [16, 8], strides = [1, 1]} : vector<32x8xf32> to vector<16x8xf32>
    %cst_34 = arith.constant dense<0.000000e+00> : vector<128x8xf32>
    %51 = tpu.matmul %9, %50, %cst_34 {dimension_numbers = #tpu.dot_dimension_numbers<[1], [0], [0], [1], [0, 0, 1, 1], [], []>} : vector<128x16xf32>, vector<16x8xf32>, vector<128x8xf32> -> vector<128x8xf32>
    %52 = arith.mulf %51, %10 : vector<128x8xf32>
    %cst_35 = arith.constant dense<0.000000e+00> : vector<128xf32>
    %53 = vector.multi_reduction <add>, %52, %cst_35 [1] : vector<128x8xf32> to vector<128xf32>
    %54 = vector.shape_cast %53 : vector<128xf32> to vector<128x1xf32>
    %55 = vector.broadcast %54 : vector<128x1xf32> to vector<128x16xf32>
    %56 = arith.mulf %55, %11 : vector<128x16xf32>
    %cst_36 = arith.constant dense<0.000000e+00> : vector<16x16xf32>
    %57 = tpu.matmul %12, %56, %cst_36 {dimension_numbers = #tpu.dot_dimension_numbers<[1], [0], [0], [1], [0, 0, 1, 1], [], []>} : vector<16x128xf32>, vector<128x16xf32>, vector<16x16xf32> -> vector<16x16xf32>
    %58 = arith.addf %57, %13 : vector<16x16xf32>
    %cst_37 = arith.constant dense<0xFF800000> : vector<16xf32>
    %59 = vector.multi_reduction <maximumf>, %58, %cst_37 [1] : vector<16x16xf32> to vector<16xf32>
    %60 = vector.shape_cast %59 : vector<16xf32> to vector<16x1xf32>
    %61 = vector.broadcast %60 : vector<16x1xf32> to vector<16x16xf32>
    %62 = arith.subf %58, %61 : vector<16x16xf32>
    %63 = math.exp %62 : vector<16x16xf32>
    %cst_38 = arith.constant dense<0.000000e+00> : vector<16xf32>
    %64 = vector.multi_reduction <add>, %63, %cst_38 [1] : vector<16x16xf32> to vector<16xf32>
    %65 = vector.shape_cast %64 : vector<16xf32> to vector<16x1xf32>
    %66 = vector.broadcast %65 : vector<16x1xf32> to vector<16x16xf32>
    %67 = arith.divf %63, %66 : vector<16x16xf32>
    %68 = arith.mulf %67, %19 : vector<16x16xf32>
    %cst_39 = arith.constant dense<0.000000e+00> : vector<16xf32>
    %69 = vector.multi_reduction <add>, %68, %cst_39 [1] : vector<16x16xf32> to vector<16xf32>
    %70 = vector.shape_cast %69 : vector<16xf32> to vector<16x1xf32>
    %71 = vector.extract_strided_slice %2 {offsets = [16, 0], sizes = [16, 32], strides = [1, 1]} : vector<32x32xf32> to vector<16x32xf32>
    %72 = vector.broadcast %70 : vector<16x1xf32> to vector<16x32xf32>
    %73 = arith.mulf %72, %71 : vector<16x32xf32>
    %74 = vector.extract_strided_slice %5 {offsets = [16, 0], sizes = [16, 32], strides = [1, 1]} : vector<32x32xf32> to vector<16x32xf32>
    %cst_40 = arith.constant dense<0.000000e+00> : vector<16x32xf32>
    %75 = tpu.matmul %67, %74, %cst_40 {dimension_numbers = #tpu.dot_dimension_numbers<[1], [0], [0], [1], [0, 0, 1, 1], [], []>} : vector<16x16xf32>, vector<16x32xf32>, vector<16x32xf32> -> vector<16x32xf32>
    %76 = arith.addf %73, %75 : vector<16x32xf32>
    %77 = vector.broadcast %14 : vector<1x32xf32> to vector<16x32xf32>
    %78 = arith.addf %76, %77 : vector<16x32xf32>
    %c16 = arith.constant 16 : index
    %c0_41 = arith.constant 0 : index
    %79 = vector.load %arg12[%c16, %c0_41] : memref<32x32xf32, #tpu.memory_space<vmem>>, vector<16x32xf32>
    tpu.vector_store %arg12[%c16, %c0_41], %78 {strides = array<i32>} : memref<32x32xf32, #tpu.memory_space<vmem>>, vector<16x32xf32>,
    return
  }
  func.func @transform_0(%arg0: i32) -> (i32, i32) {
    %c0_i32 = arith.constant 0 : i32
    %c0_i32_0 = arith.constant 0 : i32
    %c0_i32_1 = arith.constant 0 : i32
    return %c0_i32, %c0_i32_0 : i32, i32
  }
  func.func @transform_1(%arg0: i32) -> (i32, i32) {
    %c0_i32 = arith.constant 0 : i32
    %c0_i32_0 = arith.constant 0 : i32
    %c0_i32_1 = arith.constant 0 : i32
    return %c0_i32, %c0_i32_0 : i32, i32
  }
  func.func @transform_2(%arg0: i32) -> (i32, i32) {
    %c0_i32 = arith.constant 0 : i32
    %c0_i32_0 = arith.constant 0 : i32
    %c0_i32_1 = arith.constant 0 : i32
    return %c0_i32, %c0_i32_0 : i32, i32
  }
  func.func @transform_3(%arg0: i32) -> (i32, i32) {
    %c0_i32 = arith.constant 0 : i32
    %c0_i32_0 = arith.constant 0 : i32
    %c0_i32_1 = arith.constant 0 : i32
    return %c0_i32, %c0_i32_0 : i32, i32
  }
  func.func @transform_4(%arg0: i32) -> (i32, i32) {
    %c0_i32 = arith.constant 0 : i32
    %c0_i32_0 = arith.constant 0 : i32
    %c0_i32_1 = arith.constant 0 : i32
    return %c0_i32, %c0_i32_0 : i32, i32
  }
  func.func @transform_5(%arg0: i32) -> (i32, i32) {
    %c0_i32 = arith.constant 0 : i32
    %c0_i32_0 = arith.constant 0 : i32
    %c0_i32_1 = arith.constant 0 : i32
    return %c0_i32, %c0_i32_0 : i32, i32
  }
  func.func @transform_6(%arg0: i32) -> (i32, i32) {
    %c0_i32 = arith.constant 0 : i32
    %c0_i32_0 = arith.constant 0 : i32
    %c0_i32_1 = arith.constant 0 : i32
    return %c0_i32, %c0_i32_0 : i32, i32
  }
  func.func @transform_7(%arg0: i32) -> (i32, i32) {
    %c0_i32 = arith.constant 0 : i32
    %c0_i32_0 = arith.constant 0 : i32
    %c0_i32_1 = arith.constant 0 : i32
    return %c0_i32, %c0_i32_0 : i32, i32
  }
  func.func @transform_8(%arg0: i32) -> (i32, i32) {
    %c0_i32 = arith.constant 0 : i32
    %c0_i32_0 = arith.constant 0 : i32
    %c0_i32_1 = arith.constant 0 : i32
    return %c0_i32, %c0_i32_0 : i32, i32
  }
  func.func @transform_9(%arg0: i32) -> (i32, i32) {
    %c0_i32 = arith.constant 0 : i32
    %c0_i32_0 = arith.constant 0 : i32
    %c0_i32_1 = arith.constant 0 : i32
    return %c0_i32, %c0_i32_0 : i32, i32
  }
  func.func @transform_10(%arg0: i32) -> (i32, i32) {
    %c0_i32 = arith.constant 0 : i32
    %c0_i32_0 = arith.constant 0 : i32
    %c0_i32_1 = arith.constant 0 : i32
    return %c0_i32, %c0_i32_0 : i32, i32
  }
  func.func @transform_11(%arg0: i32) -> (i32, i32) {
    %c0_i32 = arith.constant 0 : i32
    %c0_i32_0 = arith.constant 0 : i32
    %c0_i32_1 = arith.constant 0 : i32
    return %c0_i32, %c0_i32_0 : i32, i32
  }
}

</mosaic_0001>

<bundles_post_ra>
// kernel: tpu_custom_call.1
= control target key start
LH: loop header
LB: loop body
LE: loop exit
PB: predicated region body
PF: predicated region fallthrough
CT: control target
= control target key end

     0   :  { %vm57_vm0 = vcmask 1043456   ;;  %vm44_vm1 = vcmask 31744   ;;  %s2389_s0 = inlined_call_operand.vmem [shape: f32[32,4], index: 0, kind: input, shape index: {}]   ;;  %s2390_s1 = inlined_call_operand.vmem [shape: f32[32,32], index: 1, kind: input, shape index: {}]   ;;  %s2391_s2 = inlined_call_operand.vmem [shape: f32[4,32], index: 2, kind: input, shape index: {}]   ;;  %s2392_s3 = inlined_call_operand.vmem [shape: f32[4,32], index: 3, kind: input, shape index: {}]   ;;  %s2393_s4 = inlined_call_operand.vmem [shape: f32[32,8], index: 4, kind: input, shape index: {}]   ;;  %s2394_s5 = inlined_call_operand.vmem [shape: f32[1,32], index: 5, kind: input, shape index: {}]   ;;  %s2395_s6 = inlined_call_operand.vmem [shape: f32[128,16], index: 6, kind: input, shape index: {}]   ;;  %s2396_s7 = inlined_call_operand.vmem [shape: f32[128,8], index: 7, kind: input, shape index: {}]   ;;  %s2397_s8 = inlined_call_operand.vmem [shape: f32[128,16], index: 8, kind: input, shape index: {}]   ;;  %s2398_s9 = inlined_call_operand.vmem [shape: f32[16,128], index: 9, kind: input, shape index: {}]   ;;  %s2399_s10 = inlined_call_operand.vmem [shape: f32[16,16], index: 10, kind: input, shape index: {}]   ;;  %s2400_s11 = inlined_call_operand.hbm [shape: f32[32,32], index: 11, kind: output, shape index: {}]  }
   0x1   :  { %v43_v0 = vld [vmem:[%s2391_s2] sm:$0xf]  ;;  %v40_v2 = vld [vmem:[%s2389_s0 + $0x8] sm:$0xff]  ;;  %v41_v5 = vld [vmem:[%s2389_s0 + $0x10] sm:$0xff] }
   0x2   :  { %v39_v1 = vld [vmem:[%s2389_s0] sm:$0xff]  ;;  %1466 = vmatprep.subr.msk.mxu0 %vm57_vm0, %v43_v0  ;;  %v240_v4 = vld [vmem:[%s2393_s4 + $0x8] sm:$0xff]  ;;  %v241_v7 = vld [vmem:[%s2393_s4 + $0x10] sm:$0xff] }
   0x3   :  { %1468 = vmatprep.mubr.msk.f32.mxu0 %vm44_vm1, %v39_v1  ;;  %v239_v3 = vld [vmem:[%s2393_s4] sm:$0xff]  ;;  %1467 = vmatpush3.msk.msra.mxu0 %vm57_vm0, %v43_v0  ;;  %v242_v8 = vld [vmem:[%s2393_s4 + $0x18] sm:$0xff] }
   0x4   :  { %v1636_v6 = vpack.c.bf16 %v240_v4, %v239_v3  ;;  %1476 = vmatprep.mubr.msk.f32.mxu1 %vm44_vm1, %v39_v1  ;;  %1469 = vmatmul.mubr.msk.f32.vlgmr.msra.gmra.mrb[0].mxu0 %vm44_vm1, %v40_v2  ;;  %v1640_v9 = vpack.c.bf16 %v242_v8, %v241_v7 }
   0x5   :  { %16 = vsyncpa [#allocation3], 0  ;;  %1471 = vmatprep.mubr.msk.f32.mxu0 %vm44_vm1, %v41_v5  ;;  %v42_v10 = vld [vmem:[%s2389_s0 + $0x18] sm:$0xff]  ;;  %v235_v11 = vld [vmem:[%s2390_s1] sm:$0xff]  ;;  %vm243_vm2 = vcmask 261120   ;;  %vm405_vm3 = vcmask 130048  }
   0x6   :  { %1637 = vmatprep.subr.bf16.mxu0 %v1636_v6  ;;  %v236_v12 = vld [vmem:[%s2390_s1 + $0x8] sm:$0xff]  ;;  %v146_v13 = vld [vmem:[%s2392_s3] sm:$0xf]  ;;  %v237_v15 = vld [vmem:[%s2390_s1 + $0x10] sm:$0xff]  ;;  %vm615_vm4 = vcmask 64512  }
   0x7   :  { %1639 = vmatpush3.bf16.msra.mxu0 %v1636_v6  ;;  %1474 = vmatprep.subr.msk.mxu1 %vm57_vm0, %v146_v13  ;;  %v1885_v14 = vld [vmem:[%s2395_s6] sm:$0xff]  ;;  %v238_v16 = vld [vmem:[%s2390_s1 + $0x18] sm:$0xff]  ;;  %v1908_v24 = vld [vmem:[%s2395_s6 + $0x8] sm:$0xff] }
   0x8   :  { %1641 = vmatprep.subr.bf16.mxu0 %v1640_v9  ;;  %1472 = vmatmul.mubr.msk.f32.gmra.mrb[2].mxu0 %vm44_vm1, %v42_v10  ;;  %v1913_v25 = vld [vmem:[%s2395_s6 + $0x10] sm:$0xff]  ;;  %v1922_v26 = vld [vmem:[%s2395_s6 + $0x18] sm:$0xff]  ;;  %v1927_v27 = vld [vmem:[%s2395_s6 + $0x20] sm:$0xff] }
   0x9   :  { %1490 = vmatprep.mubr.msk.f32.mxu0 %vm243_vm2, %v235_v11  ;;  %1475 = vmatpush3.msk.msra.mxu1 %vm57_vm0, %v146_v13  ;;  %v1936_v28 = vld [vmem:[%s2395_s6 + $0x28] sm:$0xff]  ;;  %v1941_v29 = vld [vmem:[%s2395_s6 + $0x30] sm:$0xff]  ;;  %v1950_v30 = vld [vmem:[%s2395_s6 + $0x38] sm:$0xff] }
   0xa   :  { %1477 = vmatmul.mubr.msk.f32.vlgmr.msra.gmra.mrb[0].mxu1 %vm44_vm1, %v40_v2  ;;  %v1955_v31 = vld [vmem:[%s2395_s6 + $0x40] sm:$0xff]  ;;  %v1964_v32 = vld [vmem:[%s2395_s6 + $0x48] sm:$0xff]  ;;  %v1969_v33 = vld [vmem:[%s2395_s6 + $0x50] sm:$0xff] }
   0xb   :  { %1643 = vmatpush3.bf16.msra.mxu0 %v1640_v9  ;;  %1479 = vmatprep.mubr.msk.f32.mxu1 %vm44_vm1, %v41_v5  ;;  %v1978_v34 = vld [vmem:[%s2395_s6 + $0x58] sm:$0xff]  ;;  %v1983_v35 = vld [vmem:[%s2395_s6 + $0x60] sm:$0xff]  ;;  %v1992_v36 = vld [vmem:[%s2395_s6 + $0x68] sm:$0xff] }
   0xc   :  { %v1997_v37 = vld [vmem:[%s2395_s6 + $0x70] sm:$0xff]  ;;  %v2006_v38 = vld [vmem:[%s2395_s6 + $0x78] sm:$0xff]  ;;  %v2015_v45 = vld [vmem:[%s2396_s7] sm:$0xff] }
   0xd   :  { %v2020_v47 = vld [vmem:[%s2396_s7 + $0x8] sm:$0xff]  ;;  %v2026_v50 = vld [vmem:[%s2396_s7 + $0x18] sm:$0xff]  ;;  %v2033_v54 = vld [vmem:[%s2396_s7 + $0x10] sm:$0xff] }
   0xe   :  { %1491 = vmatmul.mubr.msk.f32.vlgmr.msra.gmra.mrb[4].mxu0 %vm243_vm2, %v236_v12  ;;  %1480 = vmatmul.mubr.msk.f32.gmra.mrb[2].mxu1 %vm44_vm1, %v42_v10  ;;  %v2039_v57 = vld [vmem:[%s2396_s7 + $0x28] sm:$0xff]  ;;  %v2046_v60 = vld [vmem:[%s2396_s7 + $0x20] sm:$0xff]  ;;  %v2054_v2 = vld [vmem:[%s2396_s7 + $0x38] sm:$0xff] }
   0xf   :  { %1500 = vmatprep.mubr.msk.f32.mxu1 %vm405_vm3, %v1885_v14  ;;  %1493 = vmatprep.mubr.msk.f32.mxu0 %vm243_vm2, %v237_v15  ;;  %v2060_v4 = vld [vmem:[%s2396_s7 + $0x30] sm:$0xff]  ;;  %v2069_v11 = vld [vmem:[%s2396_s7 + $0x48] sm:$0xff]  ;;  %v2074_v12 = vld [vmem:[%s2396_s7 + $0x40] sm:$0xff] }
  0x12   :  { %1494 = vmatmul.mubr.msk.f32.gmra.mrb[6].mxu0 %vm243_vm2, %v238_v16 }
  0xd7   :  { %v1897_v17 = vpop.f32.mrb[0].mxu0 }
  0xd8   :  { %2402 = vst [vmem:[#allocation5_spill] sm:$0xff] %v1897_v17  ;;  %v1899_v18 = vpop.f32.mrb[1].mxu0 }
  0xd9   :  { %2403 = vst [vmem:[#allocation6_spill] sm:$0xff] %v1899_v18 }
  0xdb   :  { %v1901_v19 = vpop.f32.mrb[2].mxu0 }
  0xdc   :  { %2404 = vst [vmem:[#allocation7_spill] sm:$0xff] %v1901_v19  ;;  %v1903_v20 = vpop.f32.mrb[3].mxu0 }
  0xdd   :  { %2405 = vst [vmem:[#allocation8_spill] sm:$0xff] %v1903_v20  ;;  %v1478_v39 = vpop.f32.mrb[0].mxu1 }
  0xde   :  { %v216_v40 = vpop.f32.mrb[1].mxu1 }
  0xdf   :  { %v1680_v41 = vpack.c.bf16 %v1478_v39, %v216_v40  ;;  %v2083_v39 = vld [vmem:[%s2396_s7 + $0x58] sm:$0xff]  ;;  %v2088_v40 = vld [vmem:[%s2396_s7 + $0x50] sm:$0xff] }
  0xe1   :  { %v1492_v21 = vpop.f32.mrb[4].mxu0  ;;  %v1481_v42 = vpop.f32.mrb[2].mxu1 }
  0xe2   :  { %v322_v22 = vpop.f32.mrb[5].mxu0  ;;  %v226_v43 = vpop.f32.mrb[3].mxu1 }
  0xe3   :  { %v1644_v23 = vpack.c.bf16 %v1492_v21, %v322_v22  ;;  %v2010_v44 = vpack.c.bf16 %v1481_v42, %v226_v43 }
  0xe5   :  { %1645 = vmatprep.subr.bf16.mxu1 %v1644_v23 }
  0xe6   :  { %1647 = vmatpush3.bf16.msra.mxu1 %v1644_v23 }
  0xe7   :  { %1681 = vmatprep.subr.bf16.mxu1 %v1680_v41 }
  0xe9   :  { %1501 = vmatmul.mubr.msk.f32.vlgmr.msra.gmra.mrb[4].mxu1 %vm405_vm3, %v1908_v24 }
  0xea   :  { %1503 = vmatprep.mubr.msk.f32.mxu1 %vm405_vm3, %v1913_v25  ;;  %1683 = vmatpush3.bf16.msra.mxu1 %v1680_v41 }
  0xed   :  { %1504 = vmatmul.mubr.msk.f32.gmra.mrb[6].mxu1 %vm405_vm3, %v1922_v26 }
  0xee   :  { %1506 = vmatprep.mubr.msk.f32.mxu1 %vm405_vm3, %v1927_v27 }
  0xf1   :  { %1507 = vmatmul.mubr.msk.f32.gmra.mrb[8].mxu1 %vm405_vm3, %v1936_v28 }
  0xf2   :  { %1509 = vmatprep.mubr.msk.f32.mxu1 %vm405_vm3, %v1941_v29 }
  0xf5   :  { %1510 = vmatmul.mubr.msk.f32.gmra.mrb[10].mxu1 %vm405_vm3, %v1950_v30 }
  0xf6   :  { %1512 = vmatprep.mubr.msk.f32.mxu1 %vm405_vm3, %v1955_v31 }
  0xf9   :  { %1513 = vmatmul.mubr.msk.f32.gmra.mrb[12].mxu1 %vm405_vm3, %v1964_v32 }
  0xfa   :  { %1515 = vmatprep.mubr.msk.f32.mxu1 %vm405_vm3, %v1969_v33 }
  0xfd   :  { %1516 = vmatmul.mubr.msk.f32.gmra.mrb[14].mxu1 %vm405_vm3, %v1978_v34 }
  0xfe   :  { %1518 = vmatprep.mubr.msk.f32.mxu1 %vm405_vm3, %v1983_v35 }
 0x101   :  { %1519 = vmatmul.mubr.msk.f32.gmra.mrb[16].mxu1 %vm405_vm3, %v1992_v36 }
 0x102   :  { %1521 = vmatprep.mubr.msk.f32.mxu1 %vm405_vm3, %v1997_v37 }
 0x105   :  { %1522 = vmatmul.mubr.msk.f32.gmra.mrb[18].mxu1 %vm405_vm3, %v2006_v38 }
 0x1bc   :  { %v1502_v46 = vpop.f32.mrb[4].mxu1 }
 0x1bd   :  { %v520_v48 = vpop.f32.mrb[5].mxu1  ;;  %v600_v51 = vmul.f32 %v1502_v46, %v2020_v47 }
 0x1be   :  { %v599_v49 = vmul.f32 %v520_v48, %v2015_v45 }
 0x1bf   :  { %v619_v61 = vsel %vm615_vm4, %v600_v51, 0.0  ;;  %v2097_v51 = vld [vmem:[%s2396_s7 + $0x68] sm:$0xff] }
 0x1c0   :  { %v616_v52 = vsel %vm615_vm4, %v599_v49, 0.0  ;;  %v1505_v53 = vpop.f32.mrb[6].mxu1 }
 0x1c1   :  { %617 = vadd.xlane.f32.xlu0 %v616_v52  ;;  %v602_v55 = vmul.f32 %v1505_v53, %v2026_v50  ;;  %v530_v56 = vpop.f32.mrb[7].mxu1  ;;  %v2102_v52 = vld [vmem:[%s2396_s7 + $0x60] sm:$0xff] }
 0x1c2   :  { %v601_v59 = vmul.f32 %v530_v56, %v2033_v54 }
 0x1c3   :  { %v625_v58 = vsel %vm615_vm4, %v602_v55, 0.0 }
 0x1c4   :  { %626 = vadd.xlane.f32.xlu1 %v625_v58  ;;  %v1508_v62 = vpop.f32.mrb[8].mxu1  ;;  %v622_v3 = vsel %vm615_vm4, %v601_v59, 0.0 }
 0x1c5   :  { %620 = vadd.xlane.f32.xlu0 %v619_v61  ;;  %v604_v63 = vmul.f32 %v1508_v62, %v2039_v57  ;;  %v540_v0 = vpop.f32.mrb[9].mxu1  ;;  %v2111_v62 = vld [vmem:[%s2396_s7 + $0x78] sm:$0xff] }
 0x1c6   :  { %v603_v1 = vmul.f32 %v540_v0, %v2046_v60 }
 0x1c7   :  { %v631_v8 = vsel %vm615_vm4, %v604_v63, 0.0  ;;  %v2116_v63 = vld [vmem:[%s2396_s7 + $0x70] sm:$0xff] }
 0x1c8   :  { %623 = vadd.xlane.f32.xlu1 %v622_v3  ;;  %v1511_v5 = vpop.f32.mrb[10].mxu1  ;;  %v628_v6 = vsel %vm615_vm4, %v603_v1, 0.0 }
 0x1c9   :  { %v606_v7 = vmul.f32 %v1511_v5, %v2054_v2  ;;  %629 = vadd.xlane.f32.xlu0 %v628_v6  ;;  %v550_v9 = vpop.f32.mrb[11].mxu1 }
 0x1ca   :  { %v605_v10 = vmul.f32 %v550_v9, %v2060_v4 }
 0x1cb   :  { %v637_v21 = vsel %vm615_vm4, %v606_v7, 0.0 }
 0x1cc   :  { %632 = vadd.xlane.f32.xlu1 %v631_v8  ;;  %v1514_v13 = vpop.f32.mrb[12].mxu1  ;;  %v634_v15 = vsel %vm615_vm4, %v605_v10, 0.0  ;;  %v1495_v10 = vpop.f32.mrb[6].mxu0 }
 0x1cd   :  { %v608_v16 = vmul.f32 %v1514_v13, %v2069_v11  ;;  %635 = vadd.xlane.f32.xlu0 %v634_v15  ;;  %v560_v22 = vpop.f32.mrb[13].mxu1  ;;  %v332_v13 = vpop.f32.mrb[7].mxu0 }
 0x1ce   :  { %v607_v23 = vmul.f32 %v560_v22, %v2074_v12  ;;  %v2124_v15 = vpack.c.bf16 %v1495_v10, %v332_v13  ;;  %v2135_v22 = vld [vmem:[%s2397_s8] sm:$0xff] }
 0x1cf   :  { %v643_v46 = vsel %vm615_vm4, %v608_v16, 0.0  ;;  %v2129_v16 = vld [vmem:[%s2398_s9] sm:$0xff] }
 0x1d0   :  { %638 = vadd.xlane.f32.xlu1 %v637_v21  ;;  %v1517_v41 = vpop.f32.mrb[14].mxu1  ;;  %v640_v42 = vsel %vm615_vm4, %v607_v23, 0.0  ;;  %1556 = vmatprep.mubr.f32.mxu0 %v2129_v16  ;;  %v2140_v23 = vld [vmem:[%s2397_s8 + $0x8] sm:$0xff] }
 0x1d1   :  { %v610_v43 = vmul.f32 %v1517_v41, %v2083_v39  ;;  %641 = vadd.xlane.f32.xlu0 %v640_v42  ;;  %v570_v48 = vpop.f32.mrb[15].mxu1 }
 0x1d2   :  { %v609_v49 = vmul.f32 %v570_v48, %v2088_v40  ;;  %v2147_v48 = vld [vmem:[%s2397_s8 + $0x18] sm:$0xff] }
 0x1d3   :  { %v649_v58 = vsel %vm615_vm4, %v610_v43, 0.0 }
 0x1d4   :  { %644 = vadd.xlane.f32.xlu1 %v643_v46  ;;  %v1520_v53 = vpop.f32.mrb[16].mxu1  ;;  %v646_v55 = vsel %vm615_vm4, %v609_v49, 0.0  ;;  %v2152_v49 = vld [vmem:[%s2397_s8 + $0x10] sm:$0xff] }
 0x1d5   :  { %v612_v56 = vmul.f32 %v1520_v53, %v2097_v51  ;;  %647 = vadd.xlane.f32.xlu0 %v646_v55  ;;  %v580_v59 = vpop.f32.mrb[17].mxu1 }
 0x1d6   :  { %v611_v61 = vmul.f32 %v580_v59, %v2102_v52 }
 0x1d7   :  { %v655_v5 = vsel %vm615_vm4, %v612_v56, 0.0  ;;  %v2157_v56 = vld [vmem:[%s2397_s8 + $0x20] sm:$0xff] }
 0x1d8   :  { %650 = vadd.xlane.f32.xlu1 %v649_v58  ;;  %v1523_v0 = vpop.f32.mrb[18].mxu1  ;;  %v652_v1 = vsel %vm615_vm4, %v611_v61, 0.0 }
 0x1d9   :  { %v614_v3 = vmul.f32 %v1523_v0, %v2111_v62  ;;  %653 = vadd.xlane.f32.xlu0 %v652_v1  ;;  %v590_v6 = vpop.f32.mrb[19].mxu1  ;;  %v2164_v0 = vld [vmem:[%s2397_s8 + $0x28] sm:$0xff] }
 0x1da   :  { %v613_v7 = vmul.f32 %v590_v6, %v2116_v63  ;;  %v2170_v6 = vld [vmem:[%s2397_s8 + $0x30] sm:$0xff] }
 0x1db   :  { %v661_v9 = vsel %vm615_vm4, %v614_v3, 0.0 }
 0x1dc   :  { %656 = vadd.xlane.f32.xlu1 %v655_v5  ;;  %v658_v8 = vsel %vm615_vm4, %v613_v7, 0.0 }
 0x1dd   :  { %659 = vadd.xlane.f32.xlu0 %v658_v8 }
 0x1e0   :  { %662 = vadd.xlane.f32.xlu1 %v661_v9  ;;  %v2176_v9 = vld [vmem:[%s2397_s8 + $0x38] sm:$0xff] }
 0x24e   :  { %v618_v21 = vpop.xlane.xlu0 %617 }
 0x24f   :  { %v664_v43 = vmul.f32 %v618_v21, %v2135_v22 }
 0x251   :  { %v627_v41 = vpop.xlane.xlu1 %626 }
 0x252   :  { %v621_v42 = vpop.xlane.xlu0 %620  ;;  %v667_v58 = vmul.f32 %v627_v41, %v2147_v48  ;;  %v2182_v41 = vld [vmem:[%s2397_s8 + $0x40] sm:$0xff] }
 0x253   :  { %v665_v46 = vmul.f32 %v621_v42, %v2140_v23 }
 0x255   :  { %v1648_v53 = vpack.c.bf16 %v665_v46, %v664_v43  ;;  %v624_v55 = vpop.xlane.xlu1 %623  ;;  %v2188_v46 = vld [vmem:[%s2397_s8 + $0x48] sm:$0xff] }
 0x256   :  { %v666_v59 = vmul.f32 %v624_v55, %v2152_v49  ;;  %v630_v61 = vpop.xlane.xlu0 %629 }
 0x257   :  { %1649 = vmatprep.subr.bf16.mxu0 %v1648_v53  ;;  %v668_v3 = vmul.f32 %v630_v61, %v2157_v56 }
 0x258   :  { %v1652_v1 = vpack.c.bf16 %v667_v58, %v666_v59  ;;  %1651 = vmatpush3.bf16.msra.mxu0 %v1648_v53  ;;  %v2194_v59 = vld [vmem:[%s2397_s8 + $0x50] sm:$0xff] }
 0x259   :  { %v633_v5 = vpop.xlane.xlu1 %632 }
 0x25a   :  { %v669_v7 = vmul.f32 %v633_v5, %v2164_v0  ;;  %1653 = vmatprep.subr.bf16.mxu0 %v1652_v1  ;;  %v636_v8 = vpop.xlane.xlu0 %635 }
 0x25b   :  { %v670_v13 = vmul.f32 %v636_v8, %v2170_v6 }
 0x25c   :  { %v1656_v10 = vpack.c.bf16 %v669_v7, %v668_v3  ;;  %1655 = vmatpush3.bf16.msra.mxu0 %v1652_v1  ;;  %v2200_v3 = vld [vmem:[%s2397_s8 + $0x58] sm:$0xff] }
 0x25d   :  { %v639_v21 = vpop.xlane.xlu1 %638 }
 0x25e   :  { %v671_v42 = vmul.f32 %v639_v21, %v2176_v9  ;;  %1657 = vmatprep.subr.bf16.mxu0 %v1656_v10  ;;  %v642_v43 = vpop.xlane.xlu0 %641 }
 0x25f   :  { %v672_v55 = vmul.f32 %v642_v43, %v2182_v41 }
 0x260   :  { %v1660_v53 = vpack.c.bf16 %v671_v42, %v670_v13  ;;  %1659 = vmatpush3.bf16.msra.mxu0 %v1656_v10  ;;  %v2206_v10 = vld [vmem:[%s2397_s8 + $0x60] sm:$0xff]  ;;  %v2212_v42 = vld [vmem:[%s2397_s8 + $0x68] sm:$0xff] }
 0x261   :  { %v645_v58 = vpop.xlane.xlu1 %644 }
 0x262   :  { %v673_v61 = vmul.f32 %v645_v58, %v2188_v46  ;;  %1661 = vmatprep.subr.bf16.mxu0 %v1660_v53  ;;  %v648_v1 = vpop.xlane.xlu0 %647  ;;  %v2218_v58 = vld [vmem:[%s2397_s8 + $0x70] sm:$0xff] }
 0x263   :  { %v674_v7 = vmul.f32 %v648_v1, %v2194_v59 }
 0x264   :  { %v1664_v5 = vpack.c.bf16 %v673_v61, %v672_v55  ;;  %1663 = vmatpush3.bf16.msra.mxu0 %v1660_v53 }
 0x265   :  { %v651_v8 = vpop.xlane.xlu1 %650 }
 0x266   :  { %v675_v13 = vmul.f32 %v651_v8, %v2200_v3  ;;  %1665 = vmatprep.subr.bf16.mxu0 %v1664_v5  ;;  %v654_v21 = vpop.xlane.xlu0 %653  ;;  %v2224_v8 = vld [vmem:[%s2397_s8 + $0x78] sm:$0xff] }
 0x267   :  { %v676_v53 = vmul.f32 %v654_v21, %v2206_v10 }
 0x268   :  { %v1668_v43 = vpack.c.bf16 %v675_v13, %v674_v7  ;;  %1667 = vmatpush3.bf16.msra.mxu0 %v1664_v5 }
 0x269   :  { %v657_v55 = vpop.xlane.xlu1 %656 }
 0x26a   :  { %v677_v61 = vmul.f32 %v657_v55, %v2212_v42  ;;  %1669 = vmatprep.subr.bf16.mxu0 %v1668_v43  ;;  %v660_v1 = vpop.xlane.xlu0 %659  ;;  %v2231_v55 = vld [vmem:[%s2398_s9 + $0x8] sm:$0xff] }
 0x26b   :  { %v678_v5 = vmul.f32 %v660_v1, %v2218_v58 }
 0x26c   :  { %v1672_v20 = vpack.c.bf16 %v677_v61, %v676_v53  ;;  %1671 = vmatpush3.bf16.msra.mxu0 %v1668_v43 }
 0x26d   :  { %v663_v7 = vpop.xlane.xlu1 %662 }
 0x26e   :  { %v679_v13 = vmul.f32 %v663_v7, %v2224_v8  ;;  %1673 = vmatprep.subr.bf16.mxu0 %v1672_v20 }
 0x270   :  { %v1676_v21 = vpack.c.bf16 %v679_v13, %v678_v5  ;;  %1675 = vmatpush3.bf16.msra.mxu0 %v1672_v20  ;;  %v2278_v20 = vld [vmem:[%s2399_s10] sm:$0xff] }
 0x271   :  { %2406 = vst [vmem:[#allocation9_spill] sm:$0xff] %v2278_v20 }
 0x272   :  { %1677 = vmatprep.subr.bf16.mxu0 %v1676_v21 }
 0x274   :  { %1679 = vmatpush3.bf16.msra.mxu0 %v1676_v21 }
 0x275   :  { %1685 = vmatprep.subr.bf16.mxu0 %v2124_v15 }
 0x277   :  { %1557 = vmatmul.mubr.f32.vlgmr.msra.gmra.mrb[8].mxu0 %v2231_v55 }
 0x278   :  { %1687 = vmatpush3.bf16.msra.mxu0 %v2124_v15  ;;  %1570 = vmatprep.mubr.msk.f32.mxu0 %vm405_vm3, %v1885_v14  ;;  %v2273_v14 = vld [vmem:[%s2399_s10 + $0x8] sm:$0xff] }
 0x279   :  { %1721 = vmatprep.subr.bf16.mxu0 %v2010_v44 }
 0x27b   :  { %1571 = vmatmul.mubr.msk.f32.vlgmr.msra.gmra.mrb[10].mxu0 %vm405_vm3, %v1908_v24 }
 0x27c   :  { %1723 = vmatpush3.bf16.msra.mxu0 %v2010_v44  ;;  %1573 = vmatprep.mubr.msk.f32.mxu0 %vm405_vm3, %v1913_v25 }
 0x27f   :  { %1574 = vmatmul.mubr.msk.f32.gmra.mrb[12].mxu0 %vm405_vm3, %v1922_v26 }
 0x280   :  { %1576 = vmatprep.mubr.msk.f32.mxu0 %vm405_vm3, %v1927_v27 }
 0x283   :  { %1577 = vmatmul.mubr.msk.f32.gmra.mrb[14].mxu0 %vm405_vm3, %v1936_v28 }
 0x284   :  { %1579 = vmatprep.mubr.msk.f32.mxu0 %vm405_vm3, %v1941_v29 }
 0x287   :  { %1580 = vmatmul.mubr.msk.f32.gmra.mrb[16].mxu0 %vm405_vm3, %v1950_v30 }
 0x288   :  { %1582 = vmatprep.mubr.msk.f32.mxu0 %vm405_vm3, %v1955_v31 }
 0x28b   :  { %1583 = vmatmul.mubr.msk.f32.gmra.mrb[18].mxu0 %vm405_vm3, %v1964_v32 }
 0x28c   :  { %1585 = vmatprep.mubr.msk.f32.mxu0 %vm405_vm3, %v1969_v33 }
 0x28f   :  { %1586 = vmatmul.mubr.msk.f32.gmra.mrb[20].mxu0 %vm405_vm3, %v1978_v34 }
 0x290   :  { %1588 = vmatprep.mubr.msk.f32.mxu0 %vm405_vm3, %v1983_v35 }
 0x293   :  { %1589 = vmatmul.mubr.msk.f32.gmra.mrb[22].mxu0 %vm405_vm3, %v1992_v36 }
 0x294   :  { %1591 = vmatprep.mubr.msk.f32.mxu0 %vm405_vm3, %v1997_v37 }
 0x297   :  { %1592 = vmatmul.mubr.msk.f32.gmra.mrb[24].mxu0 %vm405_vm3, %v2006_v38 }
 0x34a   :  { %v1558_v24 = vpop.f32.mrb[8].mxu0 }
 0x34b   :  { %v752_v25 = vadd.f32 %v1558_v24, %v2273_v14  ;;  %v746_v26 = vpop.f32.mrb[9].mxu0 }
 0x34c   :  { %v747_v27 = vadd.f32 %v746_v26, %v2278_v20 }
 0x34d   :  { %v758_v28 = vsel %vm405_vm3, %v752_v25, -inf }
 0x34e   :  { %759 = vmax.xlane.f32.xlu1 %v758_v28  ;;  %v755_v29 = vsel %vm405_vm3, %v747_v27, -inf  ;;  %v1572_v30 = vpop.f32.mrb[10].mxu0 }
 0x34f   :  { %756 = vmax.xlane.f32.xlu0 %v755_v29  ;;  %v946_v31 = vpop.f32.mrb[11].mxu0  ;;  %v1026_v29 = vmul.f32 %v1572_v30, %v2020_v47 }
 0x350   :  { %v1025_v18 = vmul.f32 %v946_v31, %v2015_v45 }
 0x352   :  { %v1575_v32 = vpop.f32.mrb[12].mxu0  ;;  %v1041_v30 = vsel %vm615_vm4, %v1025_v18, 0.0 }
 0x353   :  { %v956_v33 = vpop.f32.mrb[13].mxu0 }
 0x354   :  { %v1027_v47 = vmul.f32 %v956_v33, %v2033_v54 }
 0x356   :  { %v1578_v34 = vpop.f32.mrb[14].mxu0 }
 0x357   :  { %v966_v35 = vpop.f32.mrb[15].mxu0  ;;  %v1030_v45 = vmul.f32 %v1578_v34, %v2039_v57 }
 0x35a   :  { %v1581_v36 = vpop.f32.mrb[16].mxu0 }
 0x35b   :  { %v976_v37 = vpop.f32.mrb[17].mxu0 }
 0x35c   :  { %v1031_v54 = vmul.f32 %v976_v37, %v2060_v4 }
 0x35e   :  { %v1584_v38 = vpop.f32.mrb[18].mxu0  ;;  %v1059_v34 = vsel %vm615_vm4, %v1031_v54, 0.0 }
 0x35f   :  { %v986_v44 = vpop.f32.mrb[19].mxu0  ;;  %v1034_v57 = vmul.f32 %v1584_v38, %v2069_v11 }
 0x362   :  { %v1587_v15 = vpop.f32.mrb[20].mxu0 }
 0x363   :  { %v996_v43 = vpop.f32.mrb[21].mxu0 }
 0x364   :  { %v1035_v4 = vmul.f32 %v996_v43, %v2088_v40 }
 0x366   :  { %v1590_v53 = vpop.f32.mrb[22].mxu0  ;;  %v1071_v38 = vsel %vm615_vm4, %v1035_v4, 0.0 }
 0x367   :  { %v1006_v61 = vpop.f32.mrb[23].mxu0  ;;  %v1038_v11 = vmul.f32 %v1590_v53, %v2097_v51 }
 0x36a   :  { %v1593_v1 = vpop.f32.mrb[24].mxu0 }
 0x36b   :  { %v1016_v5 = vpop.f32.mrb[25].mxu0 }
 0x36c   :  { %v1039_v40 = vmul.f32 %v1016_v5, %v2116_v63 }
 0x36e   :  { %v1083_v43 = vsel %vm615_vm4, %v1039_v40, 0.0 }
 0x3db   :  { %v760_v7 = vpop.xlane.xlu1 %759 }
 0x3dc   :  { %v762_v13 = vsub.f32 %v752_v25, %v760_v7  ;;  %v757_v21 = vpop.xlane.xlu0 %756  ;;  %v1044_v7 = vsel %vm615_vm4, %v1026_v29, 0.0 }
 0x3dd   :  { %v761_v24 = vsub.f32 %v747_v27, %v757_v21  ;;  %v1028_v27 = vmul.f32 %v1575_v32, %v2026_v50  ;;  %v1032_v50 = vmul.f32 %v1581_v36, %v2054_v2  ;;  %v1056_v32 = vsel %vm615_vm4, %v1030_v45, 0.0 }
 0x3de   :  { %v765_v26 = vmul.f32 1.442695, %v762_v13  ;;  %v1047_v13 = vsel %vm615_vm4, %v1027_v47, 0.0  ;;  %v1036_v2 = vmul.f32 %v1587_v15, %v2083_v39  ;;  %v1040_v39 = vmul.f32 %v1593_v1, %v2111_v62 }
 0x3df   :  { %v763_v28 = vmul.f32 1.442695, %v761_v24  ;;  %v1050_v31 = vsel %vm615_vm4, %v1028_v27, 0.0  ;;  %v1062_v33 = vsel %vm615_vm4, %v1032_v50, 0.0 }
 0x3e0   :  { %1728 = vpow2.f32 %v765_v26  ;;  %v1074_v37 = vsel %vm615_vm4, %v1036_v2, 0.0  ;;  %v1086_v51 = vsel %vm615_vm4, %v1040_v39, 0.0 }
 0x3e1   :  { %1730 = vpow2.f32 %v763_v28 }
 0x3ea   :  { %v2285_v19 = vpop.eup %1728 }
 0x3eb   :  { %v2288_v17 = vpop.eup %1730  ;;  %v770_v20 = vsel %vm405_vm3, %v2285_v19, 0.0 }
 0x3ec   :  { %771 = vadd.xlane.f32.xlu1 %v770_v20  ;;  %v767_v25 = vsel %vm405_vm3, %v2288_v17, 0.0  ;;  %v1029_v20 = vmul.f32 %v966_v35, %v2046_v60  ;;  %v1033_v60 = vmul.f32 %v986_v44, %v2074_v12  ;;  %v1068_v35 = vsel %vm615_vm4, %v1034_v57, 0.0 }
 0x3ed   :  { %768 = vadd.xlane.f32.xlu0 %v767_v25  ;;  %v1037_v12 = vmul.f32 %v1006_v61, %v2102_v52  ;;  %v1080_v44 = vsel %vm615_vm4, %v1038_v11, 0.0 }
 0x3ee   :  { %v1053_v18 = vsel %vm615_vm4, %v1029_v20, 0.0  ;;  %v1065_v36 = vsel %vm615_vm4, %v1033_v60, 0.0 }
 0x3ef   :  { %v1077_v15 = vsel %vm615_vm4, %v1037_v12, 0.0 }
 0x3f0   :  { %1045 = vadd.xlane.f32.xlu1 %v1044_v7 }
 0x3f1   :  { %1042 = vadd.xlane.f32.xlu0 %v1041_v30 }
 0x3f4   :  { %1051 = vadd.xlane.f32.xlu1 %v1050_v31 }
 0x3f5   :  { %1048 = vadd.xlane.f32.xlu0 %v1047_v13 }
 0x3f8   :  { %1057 = vadd.xlane.f32.xlu1 %v1056_v32 }
 0x3f9   :  { %1054 = vadd.xlane.f32.xlu0 %v1053_v18 }
 0x3fc   :  { %1063 = vadd.xlane.f32.xlu1 %v1062_v33 }
 0x3fd   :  { %1060 = vadd.xlane.f32.xlu0 %v1059_v34 }
 0x400   :  { %1069 = vadd.xlane.f32.xlu1 %v1068_v35 }
 0x401   :  { %1066 = vadd.xlane.f32.xlu0 %v1065_v36 }
 0x404   :  { %1075 = vadd.xlane.f32.xlu1 %v1074_v37  ;;  %v2407_v37 = vld [vmem:[#allocation9_spill] sm:$0xff] }
 0x405   :  { %1072 = vadd.xlane.f32.xlu0 %v1071_v38  ;;  %v394_v38 = vlaneseq }
 0x408   :  { %1081 = vadd.xlane.f32.xlu1 %v1080_v44 }
 0x409   :  { %1078 = vadd.xlane.f32.xlu0 %v1077_v15 }
 0x40c   :  { %1087 = vadd.xlane.f32.xlu1 %v1086_v51 }
 0x40d   :  { %1084 = vadd.xlane.f32.xlu0 %v1083_v43 }
 0x479   :  { %v772_v52 = vpop.xlane.xlu1 %771 }
 0x47a   :  { %1732 = vrcp.f32 %v772_v52  ;;  %v769_v53 = vpop.xlane.xlu0 %768  ;;  %v398_v52 = vand.u32 127, %v394_v38 }
 0x47b   :  { %1734 = vrcp.f32 %v769_v53  ;;  %v1768_v53 = vmov 0.0  }
 0x47d   :  { %v1046_v61 = vpop.xlane.xlu1 %1045 }
 0x47e   :  { %v1090_v62 = vmul.f32 %v1046_v61, %v2140_v23  ;;  %v1043_v1 = vpop.xlane.xlu0 %1042 }
 0x47f   :  { %v1089_v63 = vmul.f32 %v1043_v1, %v2135_v22 }
 0x481   :  { %v1688_v5 = vpack.c.bf16 %v1090_v62, %v1089_v63  ;;  %v1052_v21 = vpop.xlane.xlu1 %1051 }
 0x482   :  { %v1049_v24 = vpop.xlane.xlu0 %1048  ;;  %v1092_v26 = vmul.f32 %v1052_v21, %v2147_v48 }
 0x483   :  { %v1091_v28 = vmul.f32 %v1049_v24, %v2152_v49  ;;  %1689 = vmatprep.subr.bf16.mxu1 %v1688_v5 }
 0x484   :  { %v1733_v29 = vpop.eup %1732 }
 0x485   :  { %v1735_v25 = vpop.eup %1734  ;;  %v1058_v27 = vpop.xlane.xlu1 %1057  ;;  %v2332_v23 = vmul.f32 %v1733_v29, %v2285_v19  ;;  %v1692_v30 = vpack.c.bf16 %v1092_v26, %v1091_v28 }
 0x486   :  { %v2329_v7 = vmul.f32 %v1735_v25, %v2288_v17  ;;  %v1055_v47 = vpop.xlane.xlu0 %1054  ;;  %v1094_v22 = vmul.f32 %v1058_v27, %v2164_v0 }
 0x487   :  { %v1093_v45 = vmul.f32 %v1055_v47, %v2157_v56 }
 0x488   :  { %1563 = vmatprep.mubr.msk.f32.mxu1 %vm405_vm3, %v2329_v7 }
 0x489   :  { %1564 = vmatmul.mubr.msk.f32.vlgmr.msra.gmra.mrb[20].mxu1 %vm405_vm3, %v2332_v23  ;;  %v1064_v48 = vpop.xlane.xlu1 %1063  ;;  %v1696_v17 = vpack.c.bf16 %v1094_v22, %v1093_v45  ;;  %v1349_v45 = vld [vmem:[%s2394_s5] ss:$0 sm:$0xff]  ;;  %s1769_s5 = smov [#allocation2]  }
 0x48a   :  { %1691 = vmatpush3.bf16.msra.mxu1 %v1688_v5  ;;  %v1061_v49 = vpop.xlane.xlu0 %1060  ;;  %1626 = vmatprep.mubr.f32.mxu1 %v2129_v16  ;;  %v1096_v19 = vmul.f32 %v1064_v48, %v2176_v9  ;;  %s1304_s24 = sshll.u32 %s1769_s5, 4  ;;  %s1305_s24 = int_to_ptr.vmem [resolvable:$true] %s1304_s24 }
 0x48b   :  { %1693 = vmatprep.subr.bf16.mxu1 %v1692_v30  ;;  %v1095_v31 = vmul.f32 %v1061_v49, %v2170_v6  ;;  %s1744_s25 = scalar_lea.vmem %s1305_s24, 512  ;;  %p1749_p1 = scmp.lt.s32.totalorder %s1305_s24, %s1305_s24 }
 0x48c   :  { %p1745_p0 = scmp.ne.s32.totalorder %s1305_s24, %s1744_s25  ;;  %p1750_p2 = scmp.lt.s32.totalorder %s1744_s25, %s1744_s25 }
 0x48d   :  { %v1070_v0 = vpop.xlane.xlu1 %1069  ;;  %v1700_v20 = vpack.c.bf16 %v1096_v19, %v1095_v31 }
 0x48e   :  { %1695 = vmatpush3.bf16.msra.mxu1 %v1692_v30  ;;  %v1067_v56 = vpop.xlane.xlu0 %1066  ;;  %v1098_v13 = vmul.f32 %v1070_v0, %v2188_v46  ;;  %v2408_v30 = vld [vmem:[#allocation5_spill] sm:$0xff]  ;;  %p1751_p3 = por %p1750_p2, %p1749_p1 }
 0x48f   :  { %1697 = vmatprep.subr.bf16.mxu1 %v1696_v17  ;;  %v1097_v50 = vmul.f32 %v1067_v56, %v2182_v41 }
 0x490   :  { %p1752_p4 = pnand %p1751_p3, %p1745_p0 }
 0x491   :  { %v1076_v32 = vpop.xlane.xlu1 %1075  ;;  %v1704_v18 = vpack.c.bf16 %v1098_v13, %v1097_v50 }
 0x492   :  { %1699 = vmatpush3.bf16.msra.mxu1 %v1696_v17  ;;  %v1073_v54 = vpop.xlane.xlu0 %1072  ;;  %v1100_v16 = vmul.f32 %v1076_v32, %v2200_v3 }
 0x493   :  { %1701 = vmatprep.subr.bf16.mxu1 %v1700_v20  ;;  %v1099_v9 = vmul.f32 %v1073_v54, %v2194_v59 }
 0x495   :  { %v1082_v57 = vpop.xlane.xlu1 %1081  ;;  %v1708_v33 = vpack.c.bf16 %v1100_v16, %v1099_v9 }
 0x496   :  { %1703 = vmatpush3.bf16.msra.mxu1 %v1700_v20  ;;  %v1079_v6 = vpop.xlane.xlu0 %1078  ;;  %v1102_v60 = vmul.f32 %v1082_v57, %v2212_v42  ;;  %v2410_v57 = vld [vmem:[#allocation7_spill] sm:$0xff] }
 0x497   :  { %1705 = vmatprep.subr.bf16.mxu1 %v1704_v18  ;;  %v1101_v46 = vmul.f32 %v1079_v6, %v2206_v10 }
 0x499   :  { %v1088_v34 = vpop.xlane.xlu1 %1087  ;;  %v1712_v2 = vpack.c.bf16 %v1102_v60, %v1101_v46 }
 0x49a   :  { %1707 = vmatpush3.bf16.msra.mxu1 %v1704_v18  ;;  %v1085_v41 = vpop.xlane.xlu0 %1084  ;;  %v1104_v35 = vmul.f32 %v1088_v34, %v2224_v8 }
 0x49b   :  { %1709 = vmatprep.subr.bf16.mxu1 %v1708_v33  ;;  %v1103_v3 = vmul.f32 %v1085_v41, %v2218_v58 }
 0x49d   :  { %v1716_v59 = vpack.c.bf16 %v1104_v35, %v1103_v3 }
 0x49e   :  { %1711 = vmatpush3.bf16.msra.mxu1 %v1708_v33  ;;  %v2411_v33 = vld [vmem:[#allocation8_spill] sm:$0xff] }
 0x49f   :  { %1713 = vmatprep.subr.bf16.mxu1 %v1712_v2 }
 0x4a2   :  { %1715 = vmatpush3.bf16.msra.mxu1 %v1712_v2 }
 0x4a3   :  { %1717 = vmatprep.subr.bf16.mxu1 %v1716_v59 }
 0x4a6   :  { %1719 = vmatpush3.bf16.msra.mxu1 %v1716_v59 }
 0x4a9   :  { %1627 = vmatmul.mubr.f32.vlgmr.msra.gmra.mrb[22].mxu1 %v2231_v55  ;;  %v395_v55 = vshrl.u32 %v394_v38, 7 }
 0x4ab   :  { %vm399_vm6 = vcmp.eq.s32.totalorder %v395_v55, %v398_v52 }
 0x4ac   :  { %v1329_v62 = vsel %vm399_vm6, 1.0, %v1768_v53 }
 0x4ad   :  { %v777_v26 = vmul.f32 %v1329_v62, %v2329_v7  ;;  %v2409_v7 = vld [vmem:[#allocation6_spill] sm:$0xff] }
 0x4af   :  { %v779_v29 = vsel %vm405_vm3, %v777_v26, 0.0 }
 0x55c   :  { %v1565_v42 = vpop.f32.mrb[20].mxu1 }
 0x55d   :  { %v859_v4 = vpop.f32.mrb[21].mxu1 }
 0x57c   :  { %v1628_v10 = vpop.f32.mrb[22].mxu1 }
 0x57d   :  { %v1177_v36 = vadd.f32 %v1628_v10, %v2273_v14  ;;  %v1171_v11 = vpop.f32.mrb[23].mxu1  ;;  %v396_v14 = vadd.s32 8, %v395_v55 }
 0x57e   :  { %v1172_v12 = vadd.f32 %v1171_v11, %v2407_v37 }
 0x57f   :  { %v1183_v8 = vsel %vm405_vm3, %v1177_v36, -inf  ;;  %vm400_vm5 = vcmp.eq.s32.totalorder %v396_v14, %v398_v52 }
 0x580   :  { %1184 = vmax.xlane.f32.xlu1 %v1183_v8  ;;  %v1180_v58 = vsel %vm405_vm3, %v1172_v12, -inf  ;;  %v1330_v61 = vsel %vm400_vm5, 1.0, %v1768_v53 }
 0x581   :  { %1181 = vmax.xlane.f32.xlu0 %v1180_v58  ;;  %v778_v21 = vmul.f32 %v1330_v61, %v2332_v23 }
 0x583   :  { %v782_v28 = vsel %vm405_vm3, %v778_v21, 0.0 }
 0x60d   :  { %v1185_v39 = vpop.xlane.xlu1 %1184 }
 0x60e   :  { %v1187_v44 = vsub.f32 %v1177_v36, %v1185_v39  ;;  %v1182_v40 = vpop.xlane.xlu0 %1181 }
 0x60f   :  { %v1186_v15 = vsub.f32 %v1172_v12, %v1182_v40 }
 0x610   :  { %v1190_v51 = vmul.f32 1.442695, %v1187_v44 }
 0x611   :  { %v1188_v43 = vmul.f32 1.442695, %v1186_v15 }
 0x612   :  { %1736 = vpow2.f32 %v1190_v51 }
 0x613   :  { %1738 = vpow2.f32 %v1188_v43 }
 0x61c   :  { %v1737_v1 = vpop.eup %1736 }
 0x61d   :  { %v1739_v63 = vpop.eup %1738  ;;  %v1195_v5 = vsel %vm405_vm3, %v1737_v1, 0.0 }
 0x61e   :  { %1196 = vadd.xlane.f32.xlu1 %v1195_v5  ;;  %v1192_v24 = vsel %vm405_vm3, %v1739_v63, 0.0 }
 0x61f   :  { %1193 = vadd.xlane.f32.xlu0 %v1192_v24 }
 0x622   :  { %783 = vadd.xlane.f32.xlu1 %v782_v28 }
 0x623   :  { %780 = vadd.xlane.f32.xlu0 %v779_v29 }
 0x6ab   :  { %v1197_v25 = vpop.xlane.xlu1 %1196 }
 0x6ac   :  { %1740 = vrcp.f32 %v1197_v25  ;;  %v1194_v27 = vpop.xlane.xlu0 %1193 }
 0x6ad   :  { %1742 = vrcp.f32 %v1194_v27 }
 0x6af   :  { %v784_v47 = vpop.xlane.xlu1 %783 }
 0x6b0   :  { %v786_v22 = vmul.f32 %v2408_v30, %v784_v47  ;;  %v781_v23 = vpop.xlane.xlu0 %780 }
 0x6b1   :  { %v785_v48 = vmul.f32 %v781_v23, %v2409_v7 }
 0x6b2   :  { %v869_v49 = vadd.f32 %v1565_v42, %v786_v22 }
 0x6b3   :  { %v868_v17 = vadd.f32 %v859_v4, %v785_v48 }
 0x6b4   :  { %v877_v19 = vadd.f32 %v1349_v45, %v869_v49 }
 0x6b5   :  { %v876_v31 = vadd.f32 %v1349_v45, %v868_v17 }
 0x6b6   :  { %v1741_v0 = vpop.eup %1740  ;;  %879 = vst.msk [vmem:[#allocation2 + $0x8] sm:$0xff] %vm243_vm2, %v877_v19 }
 0x6b7   :  { %v1743_v56 = vpop.eup %1742  ;;  %v1201_v20 = vmul.f32 %v1741_v0, %v1737_v1  ;;  %878 = vst.msk [vmem:[#allocation2] sm:$0xff] %vm243_vm2, %v876_v31 }
 0x6b8   :  { %v1199_v13 = vmul.f32 %v1743_v56, %v1739_v63 }
 0x6b9   :  { %v1203_v50 = vmul.f32 %v1330_v61, %v1201_v20 }
 0x6ba   :  { %1633 = vmatprep.mubr.msk.f32.mxu0 %vm405_vm3, %v1199_v13  ;;  %v1202_v32 = vmul.f32 %v1329_v62, %v1199_v13 }
 0x6bb   :  { %1634 = vmatmul.mubr.msk.f32.vlgmr.msra.gmra.mrb[26].mxu0 %vm405_vm3, %v1201_v20  ;;  %v1207_v54 = vsel %vm405_vm3, %v1203_v50, 0.0 }
 0x6bc   :  { %1208 = vadd.xlane.f32.xlu1 %v1207_v54  ;;  %v1204_v18 = vsel %vm405_vm3, %v1202_v32, 0.0 }
 0x6bd   :  { %1205 = vadd.xlane.f32.xlu0 %v1204_v18 }
 0x749   :  { %v1209_v16 = vpop.xlane.xlu1 %1208 }
 0x74a   :  { %v1206_v9 = vpop.xlane.xlu0 %1205  ;;  %v1211_v6 = vmul.f32 %v2410_v57, %v1209_v16 }
 0x74b   :  { %v1210_v60 = vmul.f32 %v1206_v9, %v2411_v33 }
 0x78e   :  { %v1635_v46 = vpop.f32.mrb[26].mxu0 }
 0x78f   :  { %v1294_v34 = vadd.f32 %v1635_v46, %v1211_v6  ;;  %v1284_v41 = vpop.f32.mrb[27].mxu0 }
 0x790   :  { %v1293_v2 = vadd.f32 %v1284_v41, %v1210_v60 }
 0x791   :  { %v1296_v35 = vadd.f32 %v1349_v45, %v1294_v34 }
 0x792   :  { %v1295_v3 = vadd.f32 %v1349_v45, %v1293_v2 }
 0x793   :  { %1298 = vst.msk [vmem:[#allocation2 + $0x18] sm:$0xff] %vm243_vm2, %v1296_v35 }
 0x794   :  { %1297 = vst.msk [vmem:[#allocation2 + $0x10] sm:$0xff] %vm243_vm2, %v1295_v3 }
 0x795   :  { %1755 = shalt.err (!%p1752_p4)
}
 0x796   :  { %s1756_s26 = scalar_lea.hbm %s2400_s11, 512 }
 0x797   :  { %p1757_p5 = scmp.ne.s32.totalorder %s2400_s11, %s1756_s26  ;;  %p1760_p6 = scmp.lt.u32.totalorder %s1756_s26, %s2400_s11 }
 0x799   :  { %p1762_p7 = pnand %p1760_p6, %p1757_p5 }
 0x79b   :  { %1765 = shalt.err (!%p1762_p7)
}
 0x79c   :  { %s1770_s30 = smov 128   ;;  %s1771_s12 = smov 8  }
 0x79d   :  { %1310 = dma.vmem_to_hbm [thread:$0]  %s1305_s24, 512, %s2400_s11, [#allocation3], %s1770_s30, %s1770_s30, %s1771_s12  }
 0x79e   :  { %1766 = dma.done.wait [#allocation3], 512  }
 0x79f   :  { %1767 = vsyncadd [#allocation3], 4294966784 }
 0x7a0   :  { %1314 = vsyncpa [#allocation3], 1 }

</bundles_post_ra>
